<compile_context>
chip_gen: v5e
topology: v5e:2x2
jax: 0.10.0
libtpu: 0.0.40
codegen_flags: <defaults>
</compile_context>

<pallas_src>
import jax
import jax.numpy as jnp
from jax.experimental import pallas as pl
from jax.experimental.pallas import tpu as pltpu

_LANE = 128


def _round_up(v, m):
    return ((v + m - 1) // m) * m


def _choose_tiling(n):
    """Generation-aware dst-tile choice + VMEM limit derived from block sizes."""
    n_pad_min = max(_round_up(n, _LANE), _LANE)

    vmem_cap = 64 * 1024 * 1024                      # conservative (v7x) fallback
    try:
        vmem_cap = int(pltpu.get_tpu_info().vmem_capacity_bytes)
    except Exception:
        pass

    # Per-buffer adjT budget: 1/8 of physical VMEM (double-buffered -> 1/4).
    #   v5e/v6e (128 MiB) -> 16 MiB/buffer;  v7x (64 MiB) -> 8 MiB/buffer.
    buf_budget = vmem_cap // 8
    tile = buf_budget // (n_pad_min * 2)             # bf16 adjacency
    tile = max(_LANE, min((tile // _LANE) * _LANE, 2048))
    tile = min(tile, n_pad_min)
    n_pad = _round_up(n, tile)
    n_tiles = n_pad // tile

    # VMEM accounting: 2x adjT block (double buffer) + resident h row
    # + double-buffered s1b / out tiles + 1 MiB slack.
    adj_block = n_pad * tile * 2
    needed = 2 * adj_block + 2 * (n_pad * 2) + 4 * (tile * 4) + (1 << 20)
    vmem_limit = int(min(max(needed, 16 << 20), vmem_cap * 3 // 4))
    return tile, n_pad, n_tiles, vmem_limit


# -----------------------------------------------------------------------------
# Pallas kernel: one contiguous adjT dst tile per grid step.
#   s2[dst] = sum_src h[src] * adjT[src, dst]   (bf16 stream, f32 accumulate)
#   score[dst] = (alpha*x@w1 + bias)[dst] + s2[dst]
# -----------------------------------------------------------------------------
def _glapool_score_kernel(s1b_ref, h_ref, adjt_ref, out_ref):
    s2 = jnp.dot(h_ref[...], adjt_ref[0],
                 preferred_element_type=jnp.float32)        # [1, TILE]
    out_ref[...] = s1b_ref[...] + s2


# -----------------------------------------------------------------------------
# Dense normalized adjacency (remove_self_loops + gcn_norm), transposed
# (adjT[src, dst]), padded, bf16.
# -----------------------------------------------------------------------------
def build_gcn_adj_t(edge_index, num_nodes, n_pad, dtype=jnp.bfloat16):
    # TODO(synk): cache this across layers/steps when the graph is static; for
    # E << N^2 replace with an O(E) segment-sum (CSR + scalar prefetch) path —
    # this dense O(N^2) build dominates end-to-end time outside the kernel.
    src, dst = edge_index[0], edge_index[1]
    w = jnp.where(src != dst, 1.0, 0.0).astype(jnp.float32)   # remove_self_loops
    adj_t = jnp.zeros((num_nodes, num_nodes), jnp.float32).at[src, dst].add(w)
    deg = adj_t.sum(axis=0)                                   # in-degree at dst
    dinv = jnp.where(deg > 0, jax.lax.rsqrt(jnp.maximum(deg, 1e-12)), 0.0)
    adj_t = dinv[:, None] * adj_t * dinv[None, :]
    adj_t = jnp.pad(adj_t, ((0, n_pad - num_nodes), (0, n_pad - num_nodes)))
    return adj_t.astype(dtype)


# -----------------------------------------------------------------------------
# Score wrapper: hoist the two linear projections, pad, tile, call the kernel.
# -----------------------------------------------------------------------------
def glapool_score(x, edge_index, params, alpha):
    n, c = x.shape
    alpha = float(alpha)
    tile, n_pad, n_tiles, vmem_limit = _choose_tiling(n)

    adj_t = build_gcn_adj_t(edge_index, n, n_pad, dtype=jnp.bfloat16)
    # Pre-pack into fully-contiguous dst tiles: [n_tiles, N_pad, TILE].
    adj_tiles = adj_t.reshape(n_pad, n_tiles, tile).transpose(1, 0, 2)

    x_f32 = x.astype(jnp.float32)
    w1 = params["w1"].astype(jnp.float32)
    w2 = params["w2"].astype(jnp.float32)
    bias = (alpha * params["b1"]
            + (1.0 - alpha) * params["b2"]).astype(jnp.float32).reshape(())

    # Hoisted per-node vectors (computed once, lane-dense rows).
    s1b = alpha * (x_f32 @ w1)[:, 0] + bias                    # [N]  f32
    h = (1.0 - alpha) * (x_f32 @ w2)[:, 0]                     # [N]  f32
    s1b_row = jnp.pad(s1b, (0, n_pad - n)).reshape(1, n_pad)
    # NOTE: h cast to bf16 once here (s2 error grows ~with in-degree; keep f32
    # if tighter accuracy is needed at very large graphs).
    h_row = jnp.pad(h, (0, n_pad - n)).reshape(1, n_pad).astype(jnp.bfloat16)

    # If many graphs / score heads share an adjacency, stack their h rows along
    # the sublane axis to amortize the single adjacency stream (see review).
    cost = pl.CostEstimate(
        flops=int(2 * n_pad * n_pad + n_pad),
        transcendentals=0,
        bytes_accessed=int(n_pad * n_pad * 2 + n_pad * 2 + 2 * n_pad * 4),
    )

    score_row = pl.pallas_call(
        _glapool_score_kernel,
        out_shape=jax.ShapeDtypeStruct((1, n_pad), jnp.float32),
        grid=(n_tiles,),
        in_specs=[
            pl.BlockSpec((1, tile), lambda i: (0, i)),          # alpha*x@w1+bias
            pl.BlockSpec((1, n_pad), lambda i: (0, 0)),         # h (resident, bf16)
            pl.BlockSpec((1, n_pad, tile), lambda i: (i, 0, 0)),  # adjT dst tile
        ],
        out_specs=pl.BlockSpec((1, tile), lambda i: (0, i)),    # lane-dense
        compiler_params=pltpu.CompilerParams(
            dimension_semantics=("parallel",),                  # megacore split
            vmem_limit_bytes=vmem_limit),
        cost_estimate=cost,
    )(s1b_row, h_row, adj_tiles)

    return score_row[0, :n].reshape(n, 1).astype(x.dtype)


# -----------------------------------------------------------------------------
# GLAPool forward
# -----------------------------------------------------------------------------
def glapool_forward(x, edge_index, params, alpha, ratio, batch=None, flag=0):
    n = x.shape[0]
    if batch is None:
        batch = jnp.zeros((n,), jnp.int32)
    score = glapool_score(x, edge_index, params, alpha)                # [N, 1]
    if flag == 1:
        return score                                                   # (-1, 1)
    score_flat = score[:, 0]
    # custom_topk with a single graph (batch all zeros) -> static k.
    # NB: jax.lax.top_k tie-breaking order may differ from torch.topk on ties.
    k = max(int(ratio * n), 1)
    _, perm = jax.lax.top_k(score_flat, k)
    x_pooled = x[perm] * jnp.tanh(score_flat[perm])[:, None]
    batch_pooled = batch[perm]
    # TODO(synk): custom_filter_adj (subgraph + relabel) yields a dynamic-size
    # edge_index; no clean static-shape Pallas/JAX equivalent, so it is omitted.
    return x_pooled, perm, batch_pooled


# -----------------------------------------------------------------------------
# Reference (plain JAX, full f32, dense non-transposed adjacency)
# -----------------------------------------------------------------------------
def glapool_score_ref(x, edge_index, params, alpha):
    n = x.shape[0]
    src, dst = edge_index[0], edge_index[1]
    w = jnp.where(src != dst, 1.0, 0.0).astype(jnp.float32)
    adj = jnp.zeros((n, n), jnp.float32).at[dst, src].add(w)
    deg = adj.sum(axis=1)
    dinv = jnp.where(deg > 0, jax.lax.rsqrt(jnp.maximum(deg, 1e-12)), 0.0)
    adj_norm = dinv[:, None] * adj * dinv[None, :]
    s1 = x @ params["w1"] + params["b1"]
    s2 = adj_norm @ (x @ params["w2"]) + params["b2"]
    return alpha * s1 + (1.0 - alpha) * s2


if __name__ == "__main__":
    N, C, E = 32, 32, 64          # nodes, in_channels, edges
    ALPHA, RATIO = 0.6, 0.5

    key = jax.random.PRNGKey(0)
    kx, ke1, ke2, kw1, kb1, kw2, kb2 = jax.random.split(key, 7)

    x = jax.random.normal(kx, (N, C), jnp.float32)
    src = jax.random.randint(ke1, (E,), 0, N, jnp.int32)
    dst = jax.random.randint(ke2, (E,), 0, N, jnp.int32)
    edge_index = jnp.stack([src, dst], axis=0)            # [2, E]

    # Deterministic synthetic parameters (shapes per module __init__):
    #   score1 = nn.Linear(C, 1)          -> w1 [C,1], b1 [1,1]
    #   score2 = GCNConv(C, 1)            -> w2 [C,1], b2 [1,1]
    params = {
        "w1": jax.random.normal(kw1, (C, 1), jnp.float32) * 0.1,
        "b1": jax.random.normal(kb1, (1, 1), jnp.float32) * 0.1,
        "w2": jax.random.normal(kw2, (C, 1), jnp.float32) * 0.1,
        "b2": jax.random.normal(kb2, (1, 1), jnp.float32) * 0.1,
    }

    # flag=1 path: score only (kernel hot path)
    score = glapool_forward(x, edge_index, params, ALPHA, RATIO, flag=1)
    score = jax.block_until_ready(score)

    # Verify against plain-JAX f32 reference (adjacency / h are bf16 in the
    # kernel, so use a modest tolerance).
    score_ref = glapool_score_ref(x, edge_index, params, ALPHA)
    assert score.shape == (N, 1)
    assert jnp.allclose(score, score_ref, atol=2e-2, rtol=2e-2), "score mismatch"

    # flag=0 path: pooled features (top-k + tanh scaling in JAX glue)
    x_pooled, perm, batch_pooled = glapool_forward(
        x, edge_index, params, ALPHA, RATIO, flag=0)
    jax.block_until_ready(x_pooled)
    assert x_pooled.shape == (max(int(RATIO * N), 1), C)

    print("KERNEL_OK")
</pallas_src>

<mosaic_0001>
module attributes {stable_mosaic.version = 11 : i64} {
  func.func @_glapool_score_kernel(%arg0: i32, %arg1: memref<1x128xf32, #tpu.memory_space<vmem>>, %arg2: memref<1x128xbf16, #tpu.memory_space<vmem>>, %arg3: memref<1x128x128xbf16, #tpu.memory_space<vmem>>, %arg4: memref<1x128xf32, #tpu.memory_space<vmem>>) attributes {dimension_semantics = [#tpu.dimension_semantics<parallel>], iteration_bounds = array<i64: 1>, scalar_prefetch = 0 : i64, scratch_operands = 0 : i64, tpu.core_type = #tpu.core_type<tc>, window_params = [{transform_indices = @transform_0, window_bounds = array<i64: 1, 128>}, {pipeline_mode = #tpu.pipeline_mode<synchronous>, transform_indices = @transform_1, window_bounds = array<i64: 1, 128>}, {transform_indices = @transform_2, window_bounds = array<i64: 1, 128, 128>}, {transform_indices = @transform_3, window_bounds = array<i64: 1, 128>}]} {
    %c0 = arith.constant 0 : index
    %c0_0 = arith.constant 0 : index
    %0 = vector.load %arg2[%c0, %c0_0] : memref<1x128xbf16, #tpu.memory_space<vmem>>, vector<1x128xbf16>
    %c0_1 = arith.constant 0 : index
    %c0_2 = arith.constant 0 : index
    %c0_3 = arith.constant 0 : index
    %1 = vector.load %arg3[%c0_1, %c0_2, %c0_3] : memref<1x128x128xbf16, #tpu.memory_space<vmem>>, vector<1x128x128xbf16>
    %2 = vector.shape_cast %1 : vector<1x128x128xbf16> to vector<128x128xbf16>
    %cst = arith.constant dense<0.000000e+00> : vector<1x128xf32>
    %3 = tpu.matmul %0, %2, %cst {dimension_numbers = #tpu.dot_dimension_numbers<[1], [0], [0], [1], [0, 0, 1, 1], [], []>} : vector<1x128xbf16>, vector<128x128xbf16>, vector<1x128xf32> -> vector<1x128xf32>
    %c0_4 = arith.constant 0 : index
    %c0_5 = arith.constant 0 : index
    %4 = vector.load %arg1[%c0_4, %c0_5] : memref<1x128xf32, #tpu.memory_space<vmem>>, vector<1x128xf32>
    %5 = arith.addf %4, %3 : vector<1x128xf32>
    %c0_6 = arith.constant 0 : index
    %c0_7 = arith.constant 0 : index
    %6 = vector.load %arg4[%c0_6, %c0_7] : memref<1x128xf32, #tpu.memory_space<vmem>>, vector<1x128xf32>
    tpu.vector_store %arg4[%c0_6, %c0_7], %5 {strides = array<i32>} : memref<1x128xf32, #tpu.memory_space<vmem>>, vector<1x128xf32>,
    return
  }
  func.func @transform_0(%arg0: i32) -> (i32, i32) {
    %c0_i32 = arith.constant 0 : i32
    %c0_i32_0 = arith.constant 0 : i32
    return %c0_i32, %arg0 : i32, i32
  }
  func.func @transform_1(%arg0: i32) -> (i32, i32) {
    %c0_i32 = arith.constant 0 : i32
    %c0_i32_0 = arith.constant 0 : i32
    %c0_i32_1 = arith.constant 0 : i32
    return %c0_i32, %c0_i32_0 : i32, i32
  }
  func.func @transform_2(%arg0: i32) -> (i32, i32, i32) {
    %c0_i32 = arith.constant 0 : i32
    %c0_i32_0 = arith.constant 0 : i32
    %c0_i32_1 = arith.constant 0 : i32
    return %arg0, %c0_i32, %c0_i32_0 : i32, i32, i32
  }
  func.func @transform_3(%arg0: i32) -> (i32, i32) {
    %c0_i32 = arith.constant 0 : i32
    %c0_i32_0 = arith.constant 0 : i32
    return %c0_i32, %arg0 : i32, i32
  }
}

</mosaic_0001>

<bundles_post_ra>
// kernel: tpu_custom_call.1
= control target key start
LH: loop header
LB: loop body
LE: loop exit
PB: predicated region body
PF: predicated region fallthrough
CT: control target
= control target key end

     0   :  { %8 = vsyncpa [#allocation3], 0  ;;  %s343_s0 = inlined_call_operand.hbm [shape: f32[1,128], index: 0, kind: input, shape index: {}]   ;;  %s344_s1 = inlined_call_operand.hbm [shape: bf16[1,128], index: 1, kind: input, shape index: {}]   ;;  %s345_s2 = inlined_call_operand.hbm [shape: bf16[1,128,128], index: 2, kind: input, shape index: {}]   ;;  %s346_s3 = inlined_call_operand.hbm [shape: f32[1,128], index: 3, kind: output, shape index: {}]  }
   0x1   :  { %9 = vsyncpa [#allocation6], 0  ;;  %s27_s14 = sshll.u32 %s344_s1, 4  ;;  %s28_s14 = int_to_ptr.hbm [resolvable:$true] %s27_s14 }
   0x2   :  { %10 = vsyncpa [#allocation4], 0  ;;  %s305_s15 = smov [#allocation5]   ;;  %s16_s19 = sshll.u32 %s343_s0, 4  ;;  %s17_s19 = int_to_ptr.hbm [resolvable:$true] %s16_s19 }
   0x3   :  { %s29_s16 = sshll.u32 %s305_s15, 4  ;;  %s306_s20 = smov [#allocation2]   ;;  %s30_s16 = int_to_ptr.vmem [resolvable:$true] %s29_s16 }
   0x4   :  { %32 = dma.hbm_to_vmem [thread:$0]  %s28_s14, 16, %s30_s16, [#allocation6]  }
   0x5   :  { %s18_s21 = sshll.u32 %s306_s20, 4  ;;  %s37_s24 = sshll.u32 %s345_s2, 4  ;;  %s19_s21 = int_to_ptr.vmem [resolvable:$true] %s18_s21  ;;  %s38_s24 = int_to_ptr.hbm [resolvable:$true] %s37_s24 }
   0x6   :  { %21 = dma.hbm_to_vmem [thread:$0]  %s17_s19, 16, %s19_s21, [#allocation3]  }
   0x7   :  { %s307_s1 = smov [#allocation7]   ;;  %s308_s26 = smov 64  }
   0x8   :  { %s39_s25 = sshll.u32 %s307_s1, 4  ;;  %s309_s27 = smov 4   ;;  %s40_s25 = int_to_ptr.vmem [resolvable:$true] %s39_s25 }
   0x9   :  { %45 = dma.hbm_to_vmem [thread:$0]  %s38_s24, 1024, %s40_s25, [#allocation6], %s308_s26, %s308_s26, %s309_s27  }
   0xa   :  { %299 = dma.done.wait [#allocation3], 16  }
   0xb   :  { %300 = vsyncadd [#allocation3], 4294967280 }
   0xc   :  { %301 = dma.done.wait [#allocation6], 1040  }
   0xd   :  { %302 = vsyncadd [#allocation6], 4294966256  ;;  %v196_v0 = vld [vmem:[#allocation7 + $0x38] sm:$0xff]  ;;  %v195_v1 = vld [vmem:[#allocation7 + $0x30] sm:$0xff]  ;;  %s310_s0 = smov [#allocation8]   ;;  %s146_s30 = sshll.u32 %s346_s3, 4  ;;  %s147_s30 = int_to_ptr.hbm [resolvable:$true] %s146_s30 }
   0xe   :  { %123 = vmatpush.bf16.msra.mxu0 %v196_v0  ;;  %v194_v2 = vld [vmem:[#allocation7 + $0x28] sm:$0xff]  ;;  %v193_v3 = vld [vmem:[#allocation7 + $0x20] sm:$0xff]  ;;  %v192_v4 = vld [vmem:[#allocation7 + $0x18] sm:$0xff]  ;;  %s144_s2 = sshll.u32 %s310_s0, 4  ;;  %s145_s2 = int_to_ptr.vmem [resolvable:$true] %s144_s2 }
   0xf   :  { %v191_v5 = vld [vmem:[#allocation7 + $0x10] sm:$0xff]  ;;  %v190_v6 = vld [vmem:[#allocation7 + $0x8] sm:$0xff]  ;;  %v189_v7 = vld [vmem:[#allocation7] sm:$0xff] }
  0x10   :  { %v58_v8 = vld [vmem:[#allocation5] sm:$0x1]  ;;  %v136_v9 = vld [vmem:[#allocation2] sm:$0x1] }
  0x12   :  { %124 = vmatpush.bf16.msra.mxu0 %v195_v1 }
  0x16   :  { %125 = vmatpush.bf16.msra.mxu0 %v194_v2 }
  0x1a   :  { %126 = vmatpush.bf16.msra.mxu0 %v193_v3 }
  0x1e   :  { %127 = vmatpush.bf16.msra.mxu0 %v192_v4 }
  0x22   :  { %128 = vmatpush.bf16.msra.mxu0 %v191_v5 }
  0x26   :  { %129 = vmatpush.bf16.msra.mxu0 %v190_v6 }
  0x2a   :  { %130 = vmatpush.bf16.msra.mxu0 %v189_v7 }
  0x2d   :  { %131 = vmatmul.bf16.vlgmr.msra.gmra.mxu0 %v58_v8 }
  0xaa   :  { %v132_v10 = vpop.f32.mrf.mxu0 }
  0xab   :  { %v137_v11 = vadd.f32 %v136_v9, %v132_v10 }
  0xad   :  { %138 = vst [vmem:[#allocation8] sm:$0x1] %v137_v11 }
  0xae   :  { %149 = dma.vmem_to_hbm [thread:$0]  %s145_s2, 16, %s147_s30, [#allocation4]  }
  0xb2   :  { %v134_v12 = vpop.f32.mrf.mxu0 }
  0xb3   :  { %303 = dma.done.wait [#allocation4], 16  }
  0xb4   :  { %304 = vsyncadd [#allocation4], 4294967280 }
  0xb5   :  { %154 = vsyncpa [#allocation3], 1 }
  0xb6   :  { %155 = vsyncpa [#allocation6], 1 }
  0xb7   :  { %156 = vsyncpa [#allocation4], 1 }

</bundles_post_ra>
